<compile_context>
chip_gen: v6e
topology: v6e:2x2x1
jax: 0.10.0
libtpu: 0.0.40
codegen_flags: <defaults>
</compile_context>

<pallas_src>
import jax
import jax.numpy as jnp
from jax.experimental import pallas as pl
from jax.experimental.pallas import tpu as pltpu


def _round_up(n, m):
    return ((n + m - 1) // m) * m


def ffn_kernel(x_ref, w1_ref, b1_ref, w2_ref, b2_ref, o_ref):
    # First linear (MXU) + bias + ReLU, f32 accumulation.
    h = jnp.dot(x_ref[...], w1_ref[...], preferred_element_type=jnp.float32)
    h = jnp.maximum(h + b1_ref[...], 0.0)            # (tm, H) + (1, H) broadcast
    # Second linear (MXU) + bias. Cast hidden to the weight dtype for the MXU
    # (intentional precision choice when weights are bf16).
    y = jnp.dot(h.astype(w2_ref.dtype), w2_ref[...],
                preferred_element_type=jnp.float32)
    y = y + b2_ref[...]                              # (tm, C) + (1, C) broadcast
    o_ref[...] = y.astype(o_ref.dtype)


def feedforward(x, w1, b1, w2, b2, *, tm=512,
                vmem_budget_bytes=20 * 1024 * 1024):
    """x: (B, T, C); w1: (C, H); b1: (H,); w2: (H, C); b2: (C,)."""
    B, T, C = x.shape
    C_in, H = w1.shape
    assert C_in == C and w2.shape == (H, C)
    rows = B * T

    dtype_bytes = jnp.dtype(x.dtype).itemsize
    sublane = 16 if dtype_bytes == 2 else 8          # (8,128) f32 / (16,128) bf16

    # Row tile: multiple of the sublane quantum, capped by the row count.
    tm_eff = min(tm, _round_up(rows, sublane))
    tm_eff = _round_up(tm_eff, sublane)

    # Shrink the tile until the per-step VMEM footprint fits the budget
    # (keeps double-buffering alive on v7x's smaller VMEM).
    def footprint(t):
        w_bytes = (C * H + H * C + H + C) * dtype_bytes   # resident weights/biases
        io_bytes = 2 * 2 * (t * C) * dtype_bytes          # double-buffered x + out
        hid_bytes = t * H * 4                             # f32 intermediate
        return 2 * w_bytes + io_bytes + hid_bytes

    while tm_eff > sublane and footprint(tm_eff) > vmem_budget_bytes:
        tm_eff = max(sublane, _round_up(tm_eff // 2, sublane))
    # TODO(synk): at real model widths where w1/w2 alone exceed VMEM, K-tile the
    # weights with an f32 accumulator scratch (P1+P3) instead of keeping them resident.

    # Pad rows to a multiple of the tile (padded rows are sliced off afterwards).
    rows_p = _round_up(rows, tm_eff)
    x2d = x.reshape(rows, C)
    if rows_p != rows:
        x2d = jnp.pad(x2d, ((0, rows_p - rows), (0, 0)))

    b1r = b1.reshape(1, H)
    b2r = b2.reshape(1, C)

    grid = (pl.cdiv(rows_p, tm_eff),)

    flops = 2 * rows * C * H * 2                      # two matmuls
    bytes_accessed = (rows * C + C * H + H + H * C + C + rows * C) * dtype_bytes

    out2d = pl.pallas_call(
        ffn_kernel,
        out_shape=jax.ShapeDtypeStruct((rows_p, C), x.dtype),
        grid_spec=pltpu.PrefetchScalarGridSpec(
            num_scalar_prefetch=0,
            grid=grid,
            in_specs=[
                pl.BlockSpec((tm_eff, C), lambda i: (i, 0)),   # stream row tiles
                pl.BlockSpec((C, H), lambda i: (0, 0)),        # w1 resident
                pl.BlockSpec((1, H), lambda i: (0, 0)),        # b1 resident
                pl.BlockSpec((H, C), lambda i: (0, 0)),        # w2 resident
                pl.BlockSpec((1, C), lambda i: (0, 0)),        # b2 resident
            ],
            out_specs=pl.BlockSpec((tm_eff, C), lambda i: (i, 0)),
        ),
        compiler_params=pltpu.CompilerParams(
            dimension_semantics=("parallel",)),  # rows independent -> v7x megacore
        cost_estimate=pl.CostEstimate(
            flops=flops, transcendentals=0, bytes_accessed=bytes_accessed),
    )(x2d, w1, b1r, w2, b2r)

    if rows_p != rows:
        out2d = out2d[:rows]
    return out2d.reshape(B, T, C)


def init_params(key, n_embed, dtype=jnp.float32):
    """Deterministic init mimicking PyTorch nn.Linear default (uniform +/- 1/sqrt(fan_in))."""
    k1, k2, k3, k4 = jax.random.split(key, 4)
    h = 4 * n_embed
    lim1 = 1.0 / (n_embed ** 0.5)
    lim2 = 1.0 / (h ** 0.5)
    # Stored as (in, out) so kernel does x @ W.
    w1 = jax.random.uniform(k1, (n_embed, h), dtype, -lim1, lim1)
    b1 = jax.random.uniform(k2, (h,), dtype, -lim1, lim1)
    w2 = jax.random.uniform(k3, (h, n_embed), dtype, -lim2, lim2)
    b2 = jax.random.uniform(k4, (n_embed,), dtype, -lim2, lim2)
    return w1, b1, w2, b2


def _reference(x, w1, b1, w2, b2):
    return jnp.maximum(x @ w1 + b1, 0.0) @ w2 + b2


if __name__ == "__main__":
    key = jax.random.PRNGKey(0)
    kx, kp, kx2, kp2 = jax.random.split(key, 4)

    # --- Small demo shape matching the module spec: batch=2, seq=8, n_embed=32 ---
    B, T, n_embed = 2, 8, 32
    x = jax.random.normal(kx, (B, T, n_embed), dtype=jnp.float32)
    w1, b1, w2, b2 = init_params(kp, n_embed)

    out = feedforward(x, w1, b1, w2, b2)
    out = jax.block_until_ready(out)
    ref = _reference(x, w1, b1, w2, b2)
    assert out.shape == (B, T, n_embed)
    assert jnp.allclose(out, ref, atol=1e-5, rtol=1e-5)

    # --- Second check: exercise multi-tile row grid + row padding ---
    B2, T2, n_embed2 = 4, 100, 64          # rows = 400, tm=128 -> grid=4, 112 padded rows
    x2 = jax.random.normal(kx2, (B2, T2, n_embed2), dtype=jnp.float32)
    p2 = init_params(kp2, n_embed2)
    out2 = jax.block_until_ready(feedforward(x2, *p2, tm=128))
    ref2 = _reference(x2, *p2)
    assert out2.shape == (B2, T2, n_embed2)
    assert jnp.allclose(out2, ref2, atol=1e-4, rtol=1e-4)

    print("KERNEL_OK")
</pallas_src>

<mosaic_0001>
module attributes {stable_mosaic.version = 11 : i64} {
  func.func @ffn_kernel(%arg0: i32, %arg1: memref<16x32xf32, #tpu.memory_space<vmem>>, %arg2: memref<32x128xf32, #tpu.memory_space<vmem>>, %arg3: memref<1x128xf32, #tpu.memory_space<vmem>>, %arg4: memref<128x32xf32, #tpu.memory_space<vmem>>, %arg5: memref<1x32xf32, #tpu.memory_space<vmem>>, %arg6: memref<16x32xf32, #tpu.memory_space<vmem>>) attributes {dimension_semantics = [#tpu.dimension_semantics<parallel>], iteration_bounds = array<i64: 1>, scalar_prefetch = 0 : i64, scratch_operands = 0 : i64, tpu.core_type = #tpu.core_type<tc>, window_params = [{transform_indices = @transform_0, window_bounds = array<i64: 16, 32>}, {pipeline_mode = #tpu.pipeline_mode<synchronous>, transform_indices = @transform_1, window_bounds = array<i64: 32, 128>}, {pipeline_mode = #tpu.pipeline_mode<synchronous>, transform_indices = @transform_2, window_bounds = array<i64: 1, 128>}, {pipeline_mode = #tpu.pipeline_mode<synchronous>, transform_indices = @transform_3, window_bounds = array<i64: 128, 32>}, {pipeline_mode = #tpu.pipeline_mode<synchronous>, transform_indices = @transform_4, window_bounds = array<i64: 1, 32>}, {transform_indices = @transform_5, window_bounds = array<i64: 16, 32>}]} {
    %c0 = arith.constant 0 : index
    %c0_0 = arith.constant 0 : index
    %0 = vector.load %arg1[%c0, %c0_0] : memref<16x32xf32, #tpu.memory_space<vmem>>, vector<16x32xf32>
    %c0_1 = arith.constant 0 : index
    %c0_2 = arith.constant 0 : index
    %1 = vector.load %arg2[%c0_1, %c0_2] : memref<32x128xf32, #tpu.memory_space<vmem>>, vector<32x128xf32>
    %cst = arith.constant dense<0.000000e+00> : vector<16x128xf32>
    %2 = tpu.matmul %0, %1, %cst {dimension_numbers = #tpu.dot_dimension_numbers<[1], [0], [0], [1], [0, 0, 1, 1], [], []>} : vector<16x32xf32>, vector<32x128xf32>, vector<16x128xf32> -> vector<16x128xf32>
    %c0_3 = arith.constant 0 : index
    %c0_4 = arith.constant 0 : index
    %3 = vector.load %arg3[%c0_3, %c0_4] : memref<1x128xf32, #tpu.memory_space<vmem>>, vector<1x128xf32>
    %4 = vector.broadcast %3 : vector<1x128xf32> to vector<16x128xf32>
    %5 = arith.addf %2, %4 : vector<16x128xf32>
    %cst_5 = arith.constant 0.000000e+00 : f32
    %6 = vector.broadcast %cst_5 : f32 to vector<16x128xf32>
    %7 = arith.maximumf %5, %6 : vector<16x128xf32>
    %c0_6 = arith.constant 0 : index
    %c0_7 = arith.constant 0 : index
    %8 = vector.load %arg4[%c0_6, %c0_7] : memref<128x32xf32, #tpu.memory_space<vmem>>, vector<128x32xf32>
    %cst_8 = arith.constant dense<0.000000e+00> : vector<16x32xf32>
    %9 = tpu.matmul %7, %8, %cst_8 {dimension_numbers = #tpu.dot_dimension_numbers<[1], [0], [0], [1], [0, 0, 1, 1], [], []>} : vector<16x128xf32>, vector<128x32xf32>, vector<16x32xf32> -> vector<16x32xf32>
    %c0_9 = arith.constant 0 : index
    %c0_10 = arith.constant 0 : index
    %10 = vector.load %arg5[%c0_9, %c0_10] : memref<1x32xf32, #tpu.memory_space<vmem>>, vector<1x32xf32>
    %11 = vector.broadcast %10 : vector<1x32xf32> to vector<16x32xf32>
    %12 = arith.addf %9, %11 : vector<16x32xf32>
    %c0_11 = arith.constant 0 : index
    %c0_12 = arith.constant 0 : index
    %13 = vector.load %arg6[%c0_11, %c0_12] : memref<16x32xf32, #tpu.memory_space<vmem>>, vector<16x32xf32>
    tpu.vector_store %arg6[%c0_11, %c0_12], %12 {strides = array<i32>} : memref<16x32xf32, #tpu.memory_space<vmem>>, vector<16x32xf32>,
    return
  }
  func.func @transform_0(%arg0: i32) -> (i32, i32) {
    %c0_i32 = arith.constant 0 : i32
    %c0_i32_0 = arith.constant 0 : i32
    return %arg0, %c0_i32 : i32, i32
  }
  func.func @transform_1(%arg0: i32) -> (i32, i32) {
    %c0_i32 = arith.constant 0 : i32
    %c0_i32_0 = arith.constant 0 : i32
    %c0_i32_1 = arith.constant 0 : i32
    return %c0_i32, %c0_i32_0 : i32, i32
  }
  func.func @transform_2(%arg0: i32) -> (i32, i32) {
    %c0_i32 = arith.constant 0 : i32
    %c0_i32_0 = arith.constant 0 : i32
    %c0_i32_1 = arith.constant 0 : i32
    return %c0_i32, %c0_i32_0 : i32, i32
  }
  func.func @transform_3(%arg0: i32) -> (i32, i32) {
    %c0_i32 = arith.constant 0 : i32
    %c0_i32_0 = arith.constant 0 : i32
    %c0_i32_1 = arith.constant 0 : i32
    return %c0_i32, %c0_i32_0 : i32, i32
  }
  func.func @transform_4(%arg0: i32) -> (i32, i32) {
    %c0_i32 = arith.constant 0 : i32
    %c0_i32_0 = arith.constant 0 : i32
    %c0_i32_1 = arith.constant 0 : i32
    return %c0_i32, %c0_i32_0 : i32, i32
  }
  func.func @transform_5(%arg0: i32) -> (i32, i32) {
    %c0_i32 = arith.constant 0 : i32
    %c0_i32_0 = arith.constant 0 : i32
    return %arg0, %c0_i32 : i32, i32
  }
}

</mosaic_0001>

<bundles_post_ra>
// kernel: tpu_custom_call.1
= control target key start
LH: loop header
LB: loop body
LE: loop exit
PB: predicated region body
PF: predicated region fallthrough
CT: control target
= control target key end

     0   :  { %vm34_vm0 = vcmask 261120   ;;  %s445_s0 = inlined_call_operand.vmem [shape: f32[16,32], index: 0, kind: input, shape index: {}]   ;;  %s446_s1 = inlined_call_operand.vmem [shape: f32[32,128], index: 1, kind: input, shape index: {}]   ;;  %s447_s2 = inlined_call_operand.vmem [shape: f32[1,128], index: 2, kind: input, shape index: {}]   ;;  %s448_s3 = inlined_call_operand.vmem [shape: f32[128,32], index: 3, kind: input, shape index: {}]   ;;  %s449_s4 = inlined_call_operand.vmem [shape: f32[1,32], index: 4, kind: input, shape index: {}]   ;;  %s450_s5 = inlined_call_operand.hbm [shape: f32[16,32], index: 5, kind: output, shape index: {}]  }
   0x1   :  { %v26_v0 = vld [vmem:[%s446_s1 + $0x18] sm:$0xff]  ;;  %v25_v1 = vld [vmem:[%s446_s1 + $0x10] sm:$0xff]  ;;  %v21_v2 = vld [vmem:[%s445_s0] sm:$0xff] }
   0x2   :  { %262 = vmatprep.subr.mxu0 %v26_v0  ;;  %v24_v3 = vld [vmem:[%s446_s1 + $0x8] sm:$0xff]  ;;  %270 = vmatprep.mubr.msk.f32.mxu0 %vm34_vm0, %v21_v2  ;;  %v133_v4 = vld [vmem:[%s448_s3 + $0x78] sm:$0xff]  ;;  %v132_v5 = vld [vmem:[%s448_s3 + $0x70] sm:$0xff] }
   0x3   :  { %263 = vmatpush3.msra.mxu0 %v26_v0  ;;  %273 = vmatprep.subr.mxu1 %v133_v4  ;;  %v23_v6 = vld [vmem:[%s446_s1] sm:$0xff]  ;;  %v131_v7 = vld [vmem:[%s448_s3 + $0x68] sm:$0xff] }
   0x4   :  { %264 = vmatprep.subr.mxu0 %v25_v1  ;;  %274 = vmatpush3.msra.mxu1 %v133_v4  ;;  %v22_v8 = vld [vmem:[%s445_s0 + $0x8] sm:$0xff]  ;;  %v130_v9 = vld [vmem:[%s448_s3 + $0x60] sm:$0xff] }
   0x5   :  { %265 = vmatpush3.msra.mxu0 %v25_v1  ;;  %275 = vmatprep.subr.mxu1 %v132_v5 }
   0x6   :  { %266 = vmatprep.subr.mxu0 %v24_v3  ;;  %276 = vmatpush3.msra.mxu1 %v132_v5 }
   0x7   :  { %267 = vmatpush3.msra.mxu0 %v24_v3 }
   0x8   :  { %10 = vsyncpa [#allocation3], 0  ;;  %268 = vmatprep.subr.mxu0 %v23_v6  ;;  %277 = vmatprep.subr.mxu1 %v131_v7  ;;  %v129_v10 = vld [vmem:[%s448_s3 + $0x58] sm:$0xff]  ;;  %v128_v11 = vld [vmem:[%s448_s3 + $0x50] sm:$0xff] }
   0x9   :  { %269 = vmatpush3.msra.mxu0 %v23_v6  ;;  %278 = vmatpush3.msra.mxu1 %v131_v7  ;;  %v127_v12 = vld [vmem:[%s448_s3 + $0x48] sm:$0xff]  ;;  %v126_v13 = vld [vmem:[%s448_s3 + $0x40] sm:$0xff]  ;;  %v125_v14 = vld [vmem:[%s448_s3 + $0x38] sm:$0xff] }
   0xa   :  { %271 = vmatmul.mubr.msk.f32.vlgmr.msra.gmra.mxu0 %vm34_vm0, %v22_v8  ;;  %279 = vmatprep.subr.mxu1 %v130_v9  ;;  %v124_v15 = vld [vmem:[%s448_s3 + $0x30] sm:$0xff]  ;;  %v123_v16 = vld [vmem:[%s448_s3 + $0x28] sm:$0xff]  ;;  %v122_v17 = vld [vmem:[%s448_s3 + $0x20] sm:$0xff] }
   0xb   :  { %280 = vmatpush3.msra.mxu1 %v130_v9  ;;  %v121_v18 = vld [vmem:[%s448_s3 + $0x18] sm:$0xff]  ;;  %v120_v19 = vld [vmem:[%s448_s3 + $0x10] sm:$0xff]  ;;  %v119_v20 = vld [vmem:[%s448_s3 + $0x8] sm:$0xff] }
   0xc   :  { %281 = vmatprep.subr.mxu1 %v129_v10  ;;  %v118_v21 = vld [vmem:[%s448_s3] sm:$0xff]  ;;  %s333_s3 = smov [#allocation2]  }
   0xd   :  { %282 = vmatpush3.msra.mxu1 %v129_v10  ;;  %v234_v22 = vld [vmem:[%s447_s2] ss:$0 sm:$0xff]  ;;  %s223_s13 = sshll.u32 %s333_s3, 4  ;;  %s224_s13 = int_to_ptr.vmem [resolvable:$true] %s223_s13 }
   0xe   :  { %283 = vmatprep.subr.mxu1 %v128_v11  ;;  %v237_v29 = vld [vmem:[%s449_s4] ss:$0 sm:$0xff]  ;;  %s311_s2 = scalar_lea.vmem %s224_s13, 256  ;;  %p316_p1 = scmp.lt.s32.totalorder %s224_s13, %s224_s13 }
   0xf   :  { %284 = vmatpush3.msra.mxu1 %v128_v11  ;;  %p312_p0 = scmp.ne.s32.totalorder %s224_s13, %s311_s2  ;;  %p317_p2 = scmp.lt.s32.totalorder %s311_s2, %s311_s2 }
  0x10   :  { %285 = vmatprep.subr.mxu1 %v127_v12 }
  0x11   :  { %286 = vmatpush3.msra.mxu1 %v127_v12  ;;  %p318_p3 = por %p317_p2, %p316_p1 }
  0x12   :  { %287 = vmatprep.subr.mxu1 %v126_v13 }
  0x13   :  { %288 = vmatpush3.msra.mxu1 %v126_v13  ;;  %p319_p4 = pnand %p318_p3, %p312_p0 }
  0x14   :  { %289 = vmatprep.subr.mxu1 %v125_v14 }
  0x15   :  { %290 = vmatpush3.msra.mxu1 %v125_v14 }
  0x16   :  { %291 = vmatprep.subr.mxu1 %v124_v15 }
  0x17   :  { %292 = vmatpush3.msra.mxu1 %v124_v15 }
  0x18   :  { %293 = vmatprep.subr.mxu1 %v123_v16 }
  0x19   :  { %294 = vmatpush3.msra.mxu1 %v123_v16 }
  0x1a   :  { %295 = vmatprep.subr.mxu1 %v122_v17 }
  0x1b   :  { %296 = vmatpush3.msra.mxu1 %v122_v17 }
  0x1c   :  { %297 = vmatprep.subr.mxu1 %v121_v18 }
  0x1d   :  { %298 = vmatpush3.msra.mxu1 %v121_v18 }
  0x1e   :  { %299 = vmatprep.subr.mxu1 %v120_v19 }
  0x1f   :  { %300 = vmatpush3.msra.mxu1 %v120_v19 }
  0x20   :  { %301 = vmatprep.subr.mxu1 %v119_v20 }
  0x21   :  { %302 = vmatpush3.msra.mxu1 %v119_v20 }
  0x22   :  { %303 = vmatprep.subr.mxu1 %v118_v21 }
  0x23   :  { %304 = vmatpush3.msra.mxu1 %v118_v21 }
  0xca   :  { %v272_v23 = vpop.f32.mrf.mxu0 }
  0xcb   :  { %v113_v24 = vadd.f32 %v272_v23, %v234_v22 }
  0xcc   :  { %v107_v25 = vpop.f32.mrf.mxu0 }
  0xcd   :  { %v108_v26 = vadd.f32 %v234_v22, %v107_v25  ;;  %v117_v28 = vmax.f32 %v113_v24, 0.0 }
  0xcf   :  { %v116_v27 = vmax.f32 %v108_v26, 0.0 }
  0xd1   :  { %305 = vmatprep.mubr.f32.mxu1 %v116_v27 }
  0xd2   :  { %306 = vmatmul.mubr.f32.vlgmr.msra.gmra.mxu1 %v117_v28 }
 0x192   :  { %v307_v30 = vpop.f32.mrf.mxu1 }
 0x193   :  { %v213_v31 = vadd.f32 %v307_v30, %v237_v29 }
 0x194   :  { %v207_v32 = vpop.f32.mrf.mxu1 }
 0x195   :  { %217 = vst.msk [vmem:[#allocation2 + $0x8] sm:$0xff] %vm34_vm0, %v213_v31  ;;  %v208_v33 = vadd.f32 %v237_v29, %v207_v32 }
 0x197   :  { %216 = vst.msk [vmem:[#allocation2] sm:$0xff] %vm34_vm0, %v208_v33 }
 0x198   :  { %322 = shalt.err (!%p319_p4)
}
 0x199   :  { %s334_s14 = smov 128   ;;  %s335_s4 = smov 8  }
 0x19a   :  { %229 = dma.vmem_to_hbm [thread:$0]  %s224_s13, 256, %s450_s5, [#allocation3], %s334_s14, %s334_s14, %s335_s4  }
 0x19b   :  { %331 = dma.done.wait [#allocation3], 256  }
 0x19c   :  { %332 = vsyncadd [#allocation3], 4294967040 }
 0x19d   :  { %233 = vsyncpa [#allocation3], 1 }

</bundles_post_ra>
